<compile_context>
chip_gen: v7x
topology: tpu7x:2x2x1
jax: 0.10.0
libtpu: 0.0.40
codegen_flags: <defaults>
</compile_context>

<pallas_src>
import functools

import jax
import jax.numpy as jnp
from jax.experimental import pallas as pl
from jax.experimental.pallas import tpu as pltpu


# ----------------------------- Pallas kernel ------------------------------- #

def _grouped_expert_kernel(tile_expert_ref, tile_valid_ref,
                           xg_ref, wg_ref, we_ref, o_ref):
    """One grid step = (token tile t, output-column block j).

    All rows of token tile t belong to one expert; the expert id is consumed by
    the expert-weight BlockSpec index_map (scalar prefetch), so the body is a
    single plain (M,K)x(K,N) MXU matmul with the per-row gate weight applied in
    f32.  Fully-padded tail tiles are gated off and just write zeros.
    """
    del tile_expert_ref  # consumed by the index_maps only
    t = pl.program_id(0)
    valid = tile_valid_ref[t] != 0

    @pl.when(valid)
    def _():
        y = jnp.dot(xg_ref[...], we_ref[0],
                    preferred_element_type=jnp.float32)      # (tn, bco) f32
        o_ref[...] = wg_ref[...] * y                         # gate col is f32

    @pl.when(jnp.logical_not(valid))
    def _():
        o_ref[...] = jnp.zeros_like(o_ref)


def grouped_expert_matmul(tile_expert, tile_valid, x_grouped, w_grouped,
                          expert_wt, *, block_tokens, block_cout):
    """x_grouped: (P, C_in) rows sorted+padded by expert; w_grouped: (P, 1) f32
    per-row gate weight (0 on padding rows); expert_wt: (E, C_in, C_out)
    (already transposed); tile_expert/tile_valid: (P // block_tokens,) int32."""
    P, C_in = x_grouped.shape
    E, C_in2, C_out = expert_wt.shape
    assert C_in == C_in2
    assert P % block_tokens == 0 and C_out % block_cout == 0
    num_tiles = P // block_tokens
    num_cout = C_out // block_cout

    # VMEM budget: double-buffered (x tile + gate col + weight tile + out tile),
    # floor 32 MiB (raise v5e/v6e defaults), cap 56 MiB (fits v7x's 64 MiB).
    blk_bytes = (block_tokens * C_in * x_grouped.dtype.itemsize
                 + block_tokens * 1 * w_grouped.dtype.itemsize
                 + C_in * block_cout * expert_wt.dtype.itemsize
                 + block_tokens * block_cout * 4)
    vmem_limit = int(min(max(4 * blk_bytes + (1 << 20), 32 << 20), 56 << 20))

    return pl.pallas_call(
        _grouped_expert_kernel,
        out_shape=jax.ShapeDtypeStruct((P, C_out), jnp.float32),
        grid_spec=pltpu.PrefetchScalarGridSpec(
            num_scalar_prefetch=2,
            grid=(num_tiles, num_cout),
            in_specs=[
                # token tile of sorted/grouped activations
                pl.BlockSpec((block_tokens, C_in), lambda t, j, te, tv: (t, 0)),
                # matching per-row gate-weight column (f32)
                pl.BlockSpec((block_tokens, 1), lambda t, j, te, tv: (t, 0)),
                # expert-weight column block, selected by the prefetched map
                pl.BlockSpec((1, C_in, block_cout),
                             lambda t, j, te, tv: (te[t], 0, j)),
            ],
            out_specs=pl.BlockSpec((block_tokens, block_cout),
                                   lambda t, j, te, tv: (t, j)),
        ),
        compiler_params=pltpu.CompilerParams(
            # token-tile axis independent -> megacore sharding on v7x;
            # C_out axis sequential so expert-sorted order (weight-DMA reuse)
            # is preserved.
            dimension_semantics=("parallel", "arbitrary"),
            vmem_limit_bytes=vmem_limit,
        ),
    )(tile_expert, tile_valid, x_grouped, w_grouped, expert_wt)


# ------------------------------ Host wrapper -------------------------------- #

@functools.partial(jax.jit,
                   static_argnames=("num_experts_per_tok", "block_tokens",
                                    "block_cout"))
def moe_layer_forward(inputs, gate_w, expert_w, *, num_experts_per_tok,
                      block_tokens=256, block_cout=None):
    """inputs: (B, T, C); gate_w: (E, C); expert_w: (E, C, C) -- weights in
    PyTorch nn.Linear (out_features, in_features) layout, no bias."""
    B, T, C = inputs.shape
    E = gate_w.shape[0]
    k = num_experts_per_tok
    N = B * T
    S = N * k
    tn = block_tokens

    # C_out tile: full C when small / not 128-aligned; otherwise cap at 512 so
    # a double-buffered weight block stays far below v7x's 64 MiB VMEM.
    if block_cout is None:
        block_cout = C if (C < 512 or C % 128 != 0) else 512

    x = inputs.reshape(N, C)

    # One-time transpose to (E, C_in, C_out): kernel becomes a plain (M,K)x(K,N)
    # contraction (no per-tile XLU transpose).  In a real model the expert
    # table would simply be stored in this layout (bf16; fp8 on v7x).
    expert_wt = jnp.swapaxes(expert_w, 1, 2)

    # ---- gating: skinny (N,C)@(C,E) + top-k + softmax (plain JAX glue) ----
    gate_logits = x @ gate_w.T                                        # (N, E)
    topk_vals, topk_idx = jax.lax.top_k(gate_logits, k)
    weights = jax.nn.softmax(topk_vals.astype(jnp.float32), axis=1)   # keep f32

    # ---- sort (token, expert) assignments by expert, pad groups to tiles ----
    flat_expert = topk_idx.reshape(-1)                                # (S,)
    flat_weight = weights.reshape(-1)                                 # (S,) f32
    flat_token = jnp.repeat(jnp.arange(N, dtype=jnp.int32), k)        # (S,)

    order = jnp.argsort(flat_expert)
    s_expert = flat_expert[order]
    s_weight = flat_weight[order]
    s_token = flat_token[order]

    g_sizes = jnp.bincount(flat_expert, length=E).astype(jnp.int32)   # (E,)
    padded_sizes = ((g_sizes + tn - 1) // tn) * tn
    padded_ends = jnp.cumsum(padded_sizes)
    padded_starts = padded_ends - padded_sizes
    group_starts = jnp.cumsum(g_sizes) - g_sizes

    rank = jnp.arange(S, dtype=jnp.int32) - group_starts[s_expert]
    pos = padded_starts[s_expert] + rank                              # unique slot

    # Static worst-case padded length (each nonempty expert pads < tn rows).
    P = ((S + E * (tn - 1) + tn - 1) // tn) * tn
    num_tiles = P // tn

    # TODO(synk): fuse this row gather into the kernel (memory_space=pl.ANY +
    # scalar-prefetched per-tile row indices + manual DMA gather, P4 pattern)
    # to avoid the extra P x C activation copy through HBM at production N.
    x_grouped = jnp.zeros((P, C), x.dtype).at[pos].set(x[s_token])
    w_grouped = jnp.zeros((P, 1), jnp.float32).at[pos].set(s_weight[:, None])
    dest = jnp.zeros((P,), jnp.int32).at[pos].set(s_token)            # pad rows -> 0

    # per-tile expert id and valid flag (fully-padded global tail is gated off)
    tile_idx = jnp.arange(num_tiles, dtype=jnp.int32)
    raw_tile_expert = jnp.minimum(
        jnp.searchsorted(padded_ends, tile_idx * tn, side="right"), E - 1
    ).astype(jnp.int32)
    n_valid_tiles = padded_ends[-1] // tn
    tile_valid = (tile_idx < n_valid_tiles).astype(jnp.int32)
    # point dead tail tiles at the last real expert so no new weight DMA fires
    last_expert = raw_tile_expert[jnp.maximum(n_valid_tiles - 1, 0)]
    tile_expert = jnp.where(tile_valid == 1, raw_tile_expert, last_expert)

    # ---- Pallas: one expert matmul (per C_out block) per token tile ----
    out_grouped = grouped_expert_matmul(
        tile_expert, tile_valid, x_grouped, w_grouped, expert_wt,
        block_tokens=tn, block_cout=block_cout)                       # (P, C) f32

    # ---- combine the k expert contributions per token in f32 ----
    results = jnp.zeros((N, C), jnp.float32).at[dest].add(out_grouped)
    return results.astype(inputs.dtype).reshape(B, T, C)


# --------------------------- Reference (pure JAX) --------------------------- #

def moe_layer_reference(inputs, gate_w, expert_w, num_experts_per_tok):
    B, T, C = inputs.shape
    E = gate_w.shape[0]
    x = inputs.reshape(B * T, C)
    logits = x @ gate_w.T
    topk_vals, topk_idx = jax.lax.top_k(logits, num_experts_per_tok)
    weights = jax.nn.softmax(topk_vals.astype(jnp.float32), axis=1).astype(x.dtype)
    results = jnp.zeros_like(x)
    for e in range(E):
        sel = (topk_idx == e)                                  # (N, k)
        w_e = jnp.sum(jnp.where(sel, weights, 0.0), axis=1)    # (N,)
        results = results + w_e[:, None] * (x @ expert_w[e].T)
    return results.reshape(B, T, C)


# ---------------------------------- Main ------------------------------------ #

if __name__ == "__main__":
    B, T, C = 2, 8, 32
    num_experts, num_experts_per_tok = 4, 2

    key = jax.random.PRNGKey(0)
    k_x, k_g, k_e = jax.random.split(key, 3)

    bound = 1.0 / (C ** 0.5)
    inputs = jax.random.normal(k_x, (B, T, C), dtype=jnp.float32)
    gate_w = jax.random.uniform(k_g, (num_experts, C), jnp.float32, -bound, bound)
    expert_w = jax.random.uniform(k_e, (num_experts, C, C), jnp.float32, -bound, bound)

    out = moe_layer_forward(
        inputs, gate_w, expert_w, num_experts_per_tok=num_experts_per_tok,
    )
    out = jax.block_until_ready(out)

    ref = moe_layer_reference(inputs, gate_w, expert_w, num_experts_per_tok)
    assert out.shape == (B, T, C)
    assert jnp.allclose(out, ref, atol=1e-5, rtol=1e-5), \
        float(jnp.max(jnp.abs(out - ref)))

    print("KERNEL_OK")
</pallas_src>

<mosaic_0001>
module attributes {stable_mosaic.version = 11 : i64} {
  func.func private @main(%arg0: i32) attributes {dimension_semantics = [#tpu.dimension_semantics<core_parallel>], iteration_bounds = array<i64: 2>, tpu.core_type = #tpu.core_type<sc_scalar_subcore>, window_params = []} {
    return
  }
}

module attributes {stable_mosaic.version = 11 : i64} {
  func.func private @main(%arg0: i32) attributes {dimension_semantics = [#tpu.dimension_semantics<core_parallel>], iteration_bounds = array<i64: 2>, tpu.core_type = #tpu.core_type<sc_scalar_subcore>, window_params = []} {
    return
  }
}

module attributes {stable_mosaic.version = 11 : i64} {
  func.func @_grouped_expert_kernel(%arg0: i32, %arg1: i32, %arg2: memref<5xi32, #tpu.memory_space<smem>>, %arg3: memref<5xi32, #tpu.memory_space<smem>>, %arg4: memref<256x32xf32, #tpu.memory_space<vmem>>, %arg5: memref<256x1xf32, #tpu.memory_space<vmem>>, %arg6: memref<1x32x32xf32, #tpu.memory_space<vmem>>, %arg7: memref<256x32xf32, #tpu.memory_space<vmem>>) attributes {dimension_semantics = [#tpu.dimension_semantics<parallel>, #tpu.dimension_semantics<arbitrary>], iteration_bounds = array<i64: 5, 1>, scalar_prefetch = 2 : i64, scratch_operands = 0 : i64, tpu.core_type = #tpu.core_type<tc>, window_params = [{transform_indices = @transform_0, window_bounds = array<i64: 256, 32>}, {transform_indices = @transform_1, window_bounds = array<i64: 256, 1>}, {transform_indices = @transform_2, window_bounds = array<i64: 1, 32, 32>}, {transform_indices = @transform_3, window_bounds = array<i64: 256, 32>}]} {
    %0 = arith.index_cast %arg0 : i32 to index
    %1 = memref.load %arg3[%0] : memref<5xi32, #tpu.memory_space<smem>>
    %c0_i32 = arith.constant 0 : i32
    %2 = arith.cmpi ne, %1, %c0_i32 : i32
    %3 = arith.extui %2 : i1 to i32
    %c0_i32_0 = arith.constant 0 : i32
    %4 = arith.cmpi ne, %3, %c0_i32_0 : i32
    scf.if %4 {
      %c0 = arith.constant 0 : index
      %c0_2 = arith.constant 0 : index
      %8 = vector.load %arg4[%c0, %c0_2] : memref<256x32xf32, #tpu.memory_space<vmem>>, vector<256x32xf32>
      %c0_3 = arith.constant 0 : index
      %c0_4 = arith.constant 0 : index
      %c0_5 = arith.constant 0 : index
      %9 = vector.load %arg6[%c0_3, %c0_4, %c0_5] : memref<1x32x32xf32, #tpu.memory_space<vmem>>, vector<1x32x32xf32>
      %10 = vector.shape_cast %9 : vector<1x32x32xf32> to vector<32x32xf32>
      %cst = arith.constant dense<0.000000e+00> : vector<256x32xf32>
      %11 = tpu.matmul %8, %10, %cst {dimension_numbers = #tpu.dot_dimension_numbers<[1], [0], [0], [1], [0, 0, 1, 1], [], []>} : vector<256x32xf32>, vector<32x32xf32>, vector<256x32xf32> -> vector<256x32xf32>
      %c0_6 = arith.constant 0 : index
      %c0_7 = arith.constant 0 : index
      %12 = vector.load %arg5[%c0_6, %c0_7] : memref<256x1xf32, #tpu.memory_space<vmem>>, vector<256x1xf32>
      %13 = vector.broadcast %12 : vector<256x1xf32> to vector<256x32xf32>
      %14 = arith.mulf %13, %11 : vector<256x32xf32>
      %c0_8 = arith.constant 0 : index
      %c0_9 = arith.constant 0 : index
      %15 = vector.load %arg7[%c0_8, %c0_9] : memref<256x32xf32, #tpu.memory_space<vmem>>, vector<256x32xf32>
      tpu.vector_store %arg7[%c0_8, %c0_9], %14 {strides = array<i32>} : memref<256x32xf32, #tpu.memory_space<vmem>>, vector<256x32xf32>,
    } else {
    }
    %true = arith.constant true
    %5 = arith.xori %2, %true : i1
    %6 = arith.extui %5 : i1 to i32
    %c0_i32_1 = arith.constant 0 : i32
    %7 = arith.cmpi ne, %6, %c0_i32_1 : i32
    scf.if %7 {
      %cst = arith.constant 0.000000e+00 : f32
      %8 = vector.broadcast %cst : f32 to vector<256x32xf32>
      %c0 = arith.constant 0 : index
      %c0_2 = arith.constant 0 : index
      %9 = vector.load %arg7[%c0, %c0_2] : memref<256x32xf32, #tpu.memory_space<vmem>>, vector<256x32xf32>
      tpu.vector_store %arg7[%c0, %c0_2], %8 {strides = array<i32>} : memref<256x32xf32, #tpu.memory_space<vmem>>, vector<256x32xf32>,
    } else {
    }
    return
  }
  func.func @transform_0(%arg0: i32, %arg1: i32, %arg2: memref<5xi32, #tpu.memory_space<smem>>, %arg3: memref<5xi32, #tpu.memory_space<smem>>) -> (i32, i32) {
    %c0_i32 = arith.constant 0 : i32
    %c0_i32_0 = arith.constant 0 : i32
    return %arg0, %c0_i32 : i32, i32
  }
  func.func @transform_1(%arg0: i32, %arg1: i32, %arg2: memref<5xi32, #tpu.memory_space<smem>>, %arg3: memref<5xi32, #tpu.memory_space<smem>>) -> (i32, i32) {
    %c0_i32 = arith.constant 0 : i32
    %c0_i32_0 = arith.constant 0 : i32
    return %arg0, %c0_i32 : i32, i32
  }
  func.func @transform_2(%arg0: i32, %arg1: i32, %arg2: memref<5xi32, #tpu.memory_space<smem>>, %arg3: memref<5xi32, #tpu.memory_space<smem>>) -> (i32, i32, i32) {
    %0 = arith.index_cast %arg0 : i32 to index
    %1 = memref.load %arg2[%0] : memref<5xi32, #tpu.memory_space<smem>>
    %c0_i32 = arith.constant 0 : i32
    %c0_i32_0 = arith.constant 0 : i32
    return %1, %c0_i32, %arg1 : i32, i32, i32
  }
  func.func @transform_3(%arg0: i32, %arg1: i32, %arg2: memref<5xi32, #tpu.memory_space<smem>>, %arg3: memref<5xi32, #tpu.memory_space<smem>>) -> (i32, i32) {
    %c0_i32 = arith.constant 0 : i32
    return %arg0, %arg1 : i32, i32
  }
}

</mosaic_0001>

<bundles_post_ra>
// kernel: custom-call
= control target key start
LH: loop header
LB: loop body
LE: loop exit
PB: predicated region body
PF: predicated region fallthrough
CT: control target
= control target key end

     0   :  { %s6_s0 = inlined_call_operand.vmem [shape: u32[5], index: 0, kind: output, shape index: {}]  }

// kernel: moe_layer_forward.1
= control target key start
LH: loop header
LB: loop body
LE: loop exit
PB: predicated region body
PF: predicated region fallthrough
CT: control target
= control target key end

     0   :  { %s1601_s0 = inlined_call_operand.vmem [shape: s32[5], index: 0, kind: input, shape index: {}]   ;;  %s1602_s2 = inlined_call_operand.vmem [shape: f32[1280,32], index: 2, kind: input, shape index: {}]   ;;  %s1603_s3 = inlined_call_operand.vmem [shape: f32[1280,1], index: 3, kind: input, shape index: {}]   ;;  %s1604_s4 = inlined_call_operand.vmem [shape: f32[4,32,32], index: 4, kind: input, shape index: {}]   ;;  %s1605_s5 = inlined_call_operand.vmem [shape: f32[1280,32], index: 5, kind: output, shape index: {}]   ;;  %s1606_s1 = inlined_call_operand.vmem [shape: s32[5], index: 1, kind: input, shape index: {}]  }
   0x1   :  { %s10_s20 = sshll.u32 %s1601_s0, 4  ;;  %s14_s23 = sshll.u32 %s1606_s1, 4  ;;  %s11_s20 = int_to_ptr.vmem [resolvable:$true] %s10_s20  ;;  %s15_s23 = int_to_ptr.vmem [resolvable:$true] %s14_s23 }
   0x2   :  { %s1211_s24 = scalar_lea.vmem %s11_s20, 16  ;;  %p1216_p1 = scmp.lt.s32.totalorder %s11_s20, %s11_s20 }
   0x3   :  { %p1212_p0 = scmp.ne.s32.totalorder %s11_s20, %s1211_s24  ;;  %p1217_p2 = scmp.lt.s32.totalorder %s1211_s24, %s1211_s24 }
   0x5   :  { %p1218_p3 = por %p1217_p2, %p1216_p1 }
   0x7   :  { %p1219_p4 = pnand %p1218_p3, %p1212_p0 }
   0x9   :  { %1222 = shalt.err (!%p1219_p4)  }
   0xa   :  { %s1261_s25 = smov [#allocation3]   ;;  %s1223_s26 = scalar_lea.vmem %s15_s23, 16 }
   0xb   :  { %13 = dma.vmem_to_smem %s11_s20, 16, %s1261_s25, [#allocation2] }
   0xc   :  { %p1224_p5 = scmp.ne.s32.totalorder %s15_s23, %s1223_s26  ;;  %p1228_p6 = scmp.lt.s32.totalorder %s15_s23, %s15_s23 }
   0xd   :  { %p1229_p7 = scmp.lt.s32.totalorder %s1223_s26, %s1223_s26 }
   0xf   :  { %p1230_p8 = por %p1229_p7, %p1228_p6 }
  0x11   :  { %p1231_p9 = pnand %p1230_p8, %p1224_p5 }
  0x13   :  { %1234 = shalt.err (!%p1231_p9)  }
  0x14   :  { %s1262_s0 = smov [#allocation4]  }
  0x15   :  { %17 = dma.vmem_to_smem %s15_s23, 16, %s1262_s0, [#allocation2] }
  0x16   :  { %1247 = dma.done.wait [#allocation2], 32 }
  0x17   :  { %1248 = vsyncadd [#allocation2], 4294967264 }
  0x18   :  { %19 = sfence }
  0x19   :  { %s1301_s1 = smov 0   ;;  %s1303_s27 = smov 0  }
  0x1a   :  { %s1305_s28 = smov 0  }
  0x1b LB: > { %s37_s29 = sadd.s32 1, %s1255_s27  ;;  %p1031_p10 = scmp.ge.s32.totalorder %s1259_s28, 1  ;;  %s1259_s28 = sphi %s1305_s28, %s25_s28   ;;  %s1255_s27 = sphi %s1303_s27, %s1608_s27   ;;  %s1251_s1 = sphi %s1301_s1, %s1607_s1  }
  0x1c   : > { %p39_p11 = scmp.ge.s32.totalorder %s37_s29, 5  ;;  %p194_p12 = scmp.lt.s32.totalorder %s1259_s28, 6 }
  0x1e   : > { %s1610_s29 = smov (%p39_p11, %s37_s29), 0  ;;  %p195_p13 = pnand %p1031_p10, %p194_p12 }
  0x1f   : > { %s1032_s30 = sshll.u32 (!%p195_p13), %s1251_s1, 5  ;;  %s247_s6 = sld [smem:[#allocation3 + %s1251_s1]] (!%p195_p13) }
  0x20   : > { %198 = sbr.rel (%p195_p13) target bundleno = 317 (0x13d), region = 32  ;;  %p236_p0 = scmp.lt.s32.totalorder (!%p195_p13), %s1032_s30, 159 }
  0x21   : > { %s1319_s7 = sld [smem:[#allocation4 + %s1251_s1]] (!%p195_p13) }
  0x25   : > { %p248_p1 = scmp.lt.s32.totalorder (!%p195_p13), %s247_s6, 3 }
  0x27   : > { %s1612_s30 = smov (!%p236_p0, %s1032_s30), 159  ;;  %s1614_s6 = smov (!%p248_p1, %s247_s6), 3 }
  0x28   : > { %s1033_s8 = sshll.u32 %s1612_s30, 3  ;;  %s1076_s18 = sshll.u32 %s1614_s6, 5 }
  0x29   : > { %s1324_s11 = scalar_lea.vmem %s1602_s2, %s1033_s8  ;;  %s1329_s14 = scalar_lea.vmem %s1603_s3, %s1033_s8 }
  0x2a   : > { %s1334_s17 = scalar_lea.vmem %s1605_s5, %s1033_s8  ;;  %s255_s21 = scalar_lea.vmem %s1604_s4, %s1076_s18 }
  0x2b   : > { %p1040_p2 = scmp.eq.s32.totalorder %s1319_s7, 0 }
  0x2c   : > { %v303_v0 = vld [vmem:[%s255_s21] sm:$0xff] (!%p1040_p2)  ;;  %v304_v1 = vld [vmem:[%s255_s21 + $0x8] sm:$0xff] (!%p1040_p2)  ;;  %v631_v2 = vld [vmem:[%s1329_s14 + $0x10] sm:$0xff] (!%p1040_p2)  ;;  %v1263_v3 = vmov (!%p1040_p2), 0   ;;  %vm307_vm0 = vcmask (!%p1040_p2), 261120  }
  0x2d   : > { %270 = sbr.rel (%p1040_p2) target bundleno = 299 (0x12b), region = 36  ;;  %1210 = vset.pattern.permute.xlu1 (!%p1040_p2), %v1263_v3  ;;  %1209 = vset.pattern.permute.xlu0 (!%p1040_p2), %v1263_v3  ;;  %v1169_v4 = vpack.c.bf16 (!%p1040_p2), %v304_v1, %v303_v0  ;;  %v629_v5 = vld [vmem:[%s1329_s14] sm:$0xff] (!%p1040_p2)  ;;  %v305_v6 = vld [vmem:[%s255_s21 + $0x10] sm:$0xff] (!%p1040_p2)  ;;  %v306_v7 = vld [vmem:[%s255_s21 + $0x18] sm:$0xff] (!%p1040_p2) }
  0x2e   : > { %673 = vperm.xlu1 (!%p1040_p2), %1210, %v631_v2   ;;  %663 = vperm.xlu0 (!%p1040_p2), %1209, %v629_v5   ;;  %v1173_v8 = vpack.c.bf16 (!%p1040_p2), %v306_v7, %v305_v6  ;;  %v632_v9 = vld [vmem:[%s1329_s14 + $0x18] sm:$0xff] (!%p1040_p2)  ;;  %v630_v10 = vld [vmem:[%s1329_s14 + $0x8] sm:$0xff] (!%p1040_p2)  ;;  %v271_v11 = vld [vmem:[%s1324_s11] sm:$0xff] (!%p1040_p2) }
  0x2f   : > { %1170 = vmatprep.subr.bf16.mxu0 (!%p1040_p2), %v1169_v4  ;;  %1177 = vmatprep.subr.bf16.mxu1 (!%p1040_p2), %v1169_v4  ;;  %v287_v12 = vld [vmem:[%s1324_s11 + $0x80] sm:$0xff] (!%p1040_p2)  ;;  %v634_v13 = vld [vmem:[%s1329_s14 + $0x28] sm:$0xff] (!%p1040_p2)  ;;  %v273_v17 = vld [vmem:[%s1324_s11 + $0x10] sm:$0xff] (!%p1040_p2) }
  0x30   : > { %1172 = vmatpush3.bf16.msra.mxu0 (!%p1040_p2), %v1169_v4  ;;  %1179 = vmatpush3.bf16.msra.mxu1 (!%p1040_p2), %v1169_v4  ;;  %v633_v14 = vld [vmem:[%s1329_s14 + $0x20] sm:$0xff] (!%p1040_p2)  ;;  %v272_v15 = vld [vmem:[%s1324_s11 + $0x8] sm:$0xff] (!%p1040_p2)  ;;  %v289_v18 = vld [vmem:[%s1324_s11 + $0x90] sm:$0xff] (!%p1040_p2) }
  0x31   : > { %1174 = vmatprep.subr.bf16.mxu0 (!%p1040_p2), %v1173_v8  ;;  %1178 = vmatprep.subr.bf16.mxu1 (!%p1040_p2), %v1173_v8  ;;  %v288_v16 = vld [vmem:[%s1324_s11 + $0x88] sm:$0xff] (!%p1040_p2)  ;;  %v636_v19 = vld [vmem:[%s1329_s14 + $0x38] sm:$0xff] (!%p1040_p2)  ;;  %v635_v20 = vld [vmem:[%s1329_s14 + $0x30] sm:$0xff] (!%p1040_p2) }
  0x32   : > { %678 = vperm.xlu1 (!%p1040_p2), %1210, %v632_v9   ;;  %668 = vperm.xlu0 (!%p1040_p2), %1209, %v630_v10   ;;  %v274_v21 = vld [vmem:[%s1324_s11 + $0x18] sm:$0xff] (!%p1040_p2)  ;;  %v275_v23 = vld [vmem:[%s1324_s11 + $0x20] sm:$0xff] (!%p1040_p2)  ;;  %v638_v25 = vld [vmem:[%s1329_s14 + $0x48] sm:$0xff] (!%p1040_p2) }
  0x33   : > { %1121 = vmatprep.mubr.msk.f32.mxu0 (!%p1040_p2), %vm307_vm0, %v271_v11  ;;  %1145 = vmatprep.mubr.msk.f32.mxu1 (!%p1040_p2), %vm307_vm0, %v287_v12  ;;  %v290_v22 = vld [vmem:[%s1324_s11 + $0x98] sm:$0xff] (!%p1040_p2)  ;;  %v291_v24 = vld [vmem:[%s1324_s11 + $0xa0] sm:$0xff] (!%p1040_p2)  ;;  %v276_v27 = vld [vmem:[%s1324_s11 + $0x28] sm:$0xff] (!%p1040_p2) }
  0x34   : > { %1176 = vmatpush3.bf16.msra.mxu0 %v1173_v8  ;;  %1180 = vmatpush3.bf16.msra.mxu1 %v1173_v8  ;;  %v637_v26 = vld [vmem:[%s1329_s14 + $0x40] sm:$0xff]  ;;  %v292_v28 = vld [vmem:[%s1324_s11 + $0xa8] sm:$0xff]  ;;  %v277_v29 = vld [vmem:[%s1324_s11 + $0x30] sm:$0xff] }
  0x35   : > { %v293_v30 = vld [vmem:[%s1324_s11 + $0xb0] sm:$0xff]  ;;  %v640_v31 = vld [vmem:[%s1329_s14 + $0x58] sm:$0xff]  ;;  %v279_v35 = vld [vmem:[%s1324_s11 + $0x40] sm:$0xff] }
  0x36   : > { %688 = vperm.xlu1 %1210, %v634_v13   ;;  %683 = vperm.xlu0 %1209, %v633_v14   ;;  %v639_v32 = vld [vmem:[%s1329_s14 + $0x50] sm:$0xff]  ;;  %v278_v33 = vld [vmem:[%s1324_s11 + $0x38] sm:$0xff]  ;;  %v295_v36 = vld [vmem:[%s1324_s11 + $0xc0] sm:$0xff] }
  0x37   : > { %1122 = vmatmul.mubr.msk.f32.vlgmr.msra.gmra.mrb[0].mxu0 %vm307_vm0, %v272_v15  ;;  %1146 = vmatmul.mubr.msk.f32.vlgmr.msra.gmra.mrb[0].mxu1 %vm307_vm0, %v288_v16  ;;  %v294_v34 = vld [vmem:[%s1324_s11 + $0xb8] sm:$0xff]  ;;  %v642_v37 = vld [vmem:[%s1329_s14 + $0x68] sm:$0xff]  ;;  %v641_v38 = vld [vmem:[%s1329_s14 + $0x60] sm:$0xff] }
  0x38   : > { %1124 = vmatprep.mubr.msk.f32.mxu0 %vm307_vm0, %v273_v17  ;;  %1148 = vmatprep.mubr.msk.f32.mxu1 %vm307_vm0, %v289_v18  ;;  %v280_v39 = vld [vmem:[%s1324_s11 + $0x48] sm:$0xff]  ;;  %v281_v41 = vld [vmem:[%s1324_s11 + $0x50] sm:$0xff]  ;;  %v644_v43 = vld [vmem:[%s1329_s14 + $0x78] sm:$0xff] }
  0x39   : > { %v296_v40 = vld [vmem:[%s1324_s11 + $0xc8] sm:$0xff]  ;;  %v297_v42 = vld [vmem:[%s1324_s11 + $0xd0] sm:$0xff]  ;;  %v282_v45 = vld [vmem:[%s1324_s11 + $0x58] sm:$0xff] }
  0x3a   : > { %698 = vperm.xlu1 %1210, %v636_v19   ;;  %693 = vperm.xlu0 %1209, %v635_v20   ;;  %v643_v44 = vld [vmem:[%s1329_s14 + $0x70] sm:$0xff]  ;;  %v298_v46 = vld [vmem:[%s1324_s11 + $0xd8] sm:$0xff]  ;;  %v283_v47 = vld [vmem:[%s1324_s11 + $0x60] sm:$0xff] }
  0x3b   : > { %1125 = vmatmul.mubr.msk.f32.gmra.mrb[2].mxu0 %vm307_vm0, %v274_v21  ;;  %1149 = vmatmul.mubr.msk.f32.gmra.mrb[2].mxu1 %vm307_vm0, %v290_v22  ;;  %v299_v48 = vld [vmem:[%s1324_s11 + $0xe0] sm:$0xff]  ;;  %v646_v49 = vld [vmem:[%s1329_s14 + $0x88] sm:$0xff]  ;;  %v285_v53 = vld [vmem:[%s1324_s11 + $0x70] sm:$0xff] }
  0x3c   : > { %1127 = vmatprep.mubr.msk.f32.mxu0 %vm307_vm0, %v275_v23  ;;  %1151 = vmatprep.mubr.msk.f32.mxu1 %vm307_vm0, %v291_v24  ;;  %v645_v50 = vld [vmem:[%s1329_s14 + $0x80] sm:$0xff]  ;;  %v284_v51 = vld [vmem:[%s1324_s11 + $0x68] sm:$0xff]  ;;  %v301_v54 = vld [vmem:[%s1324_s11 + $0xf0] sm:$0xff] }
  0x3d   : > { %v300_v52 = vld [vmem:[%s1324_s11 + $0xe8] sm:$0xff]  ;;  %v648_v55 = vld [vmem:[%s1329_s14 + $0x98] sm:$0xff]  ;;  %v647_v56 = vld [vmem:[%s1329_s14 + $0x90] sm:$0xff] }
  0x3e   : > { %708 = vperm.xlu1 %1210, %v638_v25   ;;  %703 = vperm.xlu0 %1209, %v637_v26   ;;  %v286_v57 = vld [vmem:[%s1324_s11 + $0x78] sm:$0xff]  ;;  %v650_v59 = vld [vmem:[%s1329_s14 + $0xa8] sm:$0xff]  ;;  %v649_v60 = vld [vmem:[%s1329_s14 + $0xa0] sm:$0xff] }
  0x3f   : > { %1128 = vmatmul.mubr.msk.f32.gmra.mrb[4].mxu0 %vm307_vm0, %v276_v27  ;;  %1152 = vmatmul.mubr.msk.f32.gmra.mrb[4].mxu1 %vm307_vm0, %v292_v28  ;;  %v302_v58 = vld [vmem:[%s1324_s11 + $0xf8] sm:$0xff]  ;;  %v651_v62 = vld [vmem:[%s1329_s14 + $0xb0] sm:$0xff]  ;;  %v654_v63 = vld [vmem:[%s1329_s14 + $0xc8] sm:$0xff] }
  0x40   : > { %1130 = vmatprep.mubr.msk.f32.mxu0 %vm307_vm0, %v277_v29  ;;  %1154 = vmatprep.mubr.msk.f32.mxu1 %vm307_vm0, %v293_v30  ;;  %v652_v61 = vld [vmem:[%s1329_s14 + $0xb8] sm:$0xff]  ;;  %v653_v0 = vld [vmem:[%s1329_s14 + $0xc0] sm:$0xff]  ;;  %v655_v2 = vld [vmem:[%s1329_s14 + $0xd0] sm:$0xff] }
  0x41   : > { %v656_v1 = vld [vmem:[%s1329_s14 + $0xd8] sm:$0xff]  ;;  %v658_v3 = vld [vmem:[%s1329_s14 + $0xe8] sm:$0xff]  ;;  %v657_v4 = vld [vmem:[%s1329_s14 + $0xe0] sm:$0xff] }
  0x42   : > { %718 = vperm.xlu1 %1210, %v640_v31   ;;  %713 = vperm.xlu0 %1209, %v639_v32   ;;  %v660_v5 = vld [vmem:[%s1329_s14 + $0xf8] sm:$0xff]  ;;  %v659_v6 = vld [vmem:[%s1329_s14 + $0xf0] sm:$0xff] }
  0x43   : > { %1131 = vmatmul.mubr.msk.f32.gmra.mrb[6].mxu0 %vm307_vm0, %v278_v33  ;;  %1155 = vmatmul.mubr.msk.f32.gmra.mrb[6].mxu1 %vm307_vm0, %v294_v34 }
  0x44   : > { %1133 = vmatprep.mubr.msk.f32.mxu0 %vm307_vm0, %v279_v35  ;;  %1157 = vmatprep.mubr.msk.f32.mxu1 %vm307_vm0, %v295_v36 }
  0x46   : > { %728 = vperm.xlu1 %1210, %v642_v37   ;;  %723 = vperm.xlu0 %1209, %v641_v38  }
  0x47   : > { %1134 = vmatmul.mubr.msk.f32.gmra.mrb[8].mxu0 %vm307_vm0, %v280_v39  ;;  %1158 = vmatmul.mubr.msk.f32.gmra.mrb[8].mxu1 %vm307_vm0, %v296_v40 }
  0x48   : > { %1136 = vmatprep.mubr.msk.f32.mxu0 %vm307_vm0, %v281_v41  ;;  %1160 = vmatprep.mubr.msk.f32.mxu1 %vm307_vm0, %v297_v42 }
  0x4a   : > { %738 = vperm.xlu1 %1210, %v644_v43   ;;  %733 = vperm.xlu0 %1209, %v643_v44  }
  0x4b   : > { %1137 = vmatmul.mubr.msk.f32.gmra.mrb[10].mxu0 %vm307_vm0, %v282_v45  ;;  %1161 = vmatmul.mubr.msk.f32.gmra.mrb[10].mxu1 %vm307_vm0, %v298_v46 }
  0x4c   : > { %1139 = vmatprep.mubr.msk.f32.mxu0 %vm307_vm0, %v283_v47  ;;  %1163 = vmatprep.mubr.msk.f32.mxu1 %vm307_vm0, %v299_v48 }
  0x4e   : > { %748 = vperm.xlu1 %1210, %v646_v49   ;;  %743 = vperm.xlu0 %1209, %v645_v50  }
  0x4f   : > { %1140 = vmatmul.mubr.msk.f32.gmra.mrb[12].mxu0 %vm307_vm0, %v284_v51  ;;  %1164 = vmatmul.mubr.msk.f32.gmra.mrb[12].mxu1 %vm307_vm0, %v300_v52 }
  0x50   : > { %1142 = vmatprep.mubr.msk.f32.mxu0 %vm307_vm0, %v285_v53  ;;  %1166 = vmatprep.mubr.msk.f32.mxu1 %vm307_vm0, %v301_v54 }
  0x52   : > { %758 = vperm.xlu1 %1210, %v648_v55   ;;  %753 = vperm.xlu0 %1209, %v647_v56  }
  0x53   : > { %1143 = vmatmul.mubr.msk.f32.gmra.mrb[14].mxu0 %vm307_vm0, %v286_v57  ;;  %1167 = vmatmul.mubr.msk.f32.gmra.mrb[14].mxu1 %vm307_vm0, %v302_v58 }
  0x56   : > { %768 = vperm.xlu1 %1210, %v650_v59   ;;  %763 = vperm.xlu0 %1209, %v649_v60  }
  0x5a   : > { %778 = vperm.xlu1 %1210, %v652_v61   ;;  %773 = vperm.xlu0 %1209, %v651_v62  }
  0x5e   : > { %788 = vperm.xlu1 %1210, %v654_v63   ;;  %783 = vperm.xlu0 %1209, %v653_v0  }
  0x62   : > { %798 = vperm.xlu1 %1210, %v656_v1   ;;  %793 = vperm.xlu0 %1209, %v655_v2  }
  0x66   : > { %808 = vperm.xlu1 %1210, %v658_v3   ;;  %803 = vperm.xlu0 %1209, %v657_v4  }
  0x6a   : > { %818 = vperm.xlu1 %1210, %v660_v5   ;;  %813 = vperm.xlu0 %1209, %v659_v6  }
  0xad   : > { %v674_v7 = vpop.permute.xlu1 %673  ;;  %v664_v8 = vpop.permute.xlu0 %663 }
  0xb1   : > { %v679_v9 = vpop.permute.xlu1 %678  ;;  %v669_v10 = vpop.permute.xlu0 %668 }
  0xb5   : > { %v689_v11 = vpop.permute.xlu1 %688  ;;  %v684_v12 = vpop.permute.xlu0 %683 }
  0xb9   : > { %v699_v13 = vpop.permute.xlu1 %698  ;;  %v1436_v14 = vpop.permute.xlu0 %693 }
  0xbd   : > { %v1438_v15 = vpop.permute.xlu1 %708  ;;  %v1440_v16 = vpop.permute.xlu0 %703 }
  0xc1   : > { %v1442_v17 = vpop.permute.xlu1 %718  ;;  %v1444_v18 = vpop.permute.xlu0 %713 }
  0xc5   : > { %v1446_v19 = vpop.permute.xlu1 %728  ;;  %v1448_v20 = vpop.permute.xlu0 %723 }
  0xc9   : > { %v1450_v21 = vpop.permute.xlu1 %738  ;;  %v1452_v22 = vpop.permute.xlu0 %733 }
  0xcd   : > { %v749_v23 = vpop.permute.xlu1 %748  ;;  %v744_v24 = vpop.permute.xlu0 %743 }
  0xd1   : > { %v759_v25 = vpop.permute.xlu1 %758  ;;  %v754_v26 = vpop.permute.xlu0 %753 }
  0xd5   : > { %v769_v27 = vpop.permute.xlu1 %768  ;;  %v764_v28 = vpop.permute.xlu0 %763 }
  0xd9   : > { %v779_v29 = vpop.permute.xlu1 %778  ;;  %v774_v30 = vpop.permute.xlu0 %773 }
  0xdd   : > { %v789_v39 = vpop.permute.xlu1 %788  ;;  %v784_v40 = vpop.permute.xlu0 %783 }
  0xe1   : > { %v799_v57 = vpop.permute.xlu1 %798  ;;  %v794_v58 = vpop.permute.xlu0 %793 }
 0x10a   : > { %v1123_v31 = vpop.f32.mrb[0].mxu0  ;;  %v1147_v32 = vpop.f32.mrb[0].mxu1 }
 0x10b   : > { %v822_v33 = vmul.f32 %v1123_v31, %v669_v10  ;;  %v838_v34 = vmul.f32 %v1147_v32, %v749_v23  ;;  %v470_v35 = vpop.f32.mrb[1].mxu0  ;;  %v550_v36 = vpop.f32.mrb[1].mxu1 }
 0x10c   : > { %v821_v37 = vmul.f32 %v664_v8, %v470_v35  ;;  %v837_v38 = vmul.f32 %v744_v24, %v550_v36 }
 0x10d   : > { %854 = vst.msk [vmem:[%s1334_s17 + $0x8] sm:$0xff] %vm307_vm0, %v822_v33  ;;  %870 = vst.msk [vmem:[%s1334_s17 + $0x88] sm:$0xff] %vm307_vm0, %v838_v34 }
 0x10e   : > { %853 = vst.msk [vmem:[%s1334_s17] sm:$0xff] %vm307_vm0, %v821_v37  ;;  %869 = vst.msk [vmem:[%s1334_s17 + $0x80] sm:$0xff] %vm307_vm0, %v837_v38  ;;  %v1126_v41 = vpop.f32.mrb[2].mxu0  ;;  %v1150_v42 = vpop.f32.mrb[2].mxu1 }
 0x10f   : > { %v824_v43 = vmul.f32 %v1126_v41, %v679_v9  ;;  %v840_v44 = vmul.f32 %v1150_v42, %v759_v25  ;;  %v480_v45 = vpop.f32.mrb[3].mxu0  ;;  %v560_v46 = vpop.f32.mrb[3].mxu1 }
 0x110   : > { %v823_v47 = vmul.f32 %v674_v7, %v480_v45  ;;  %v839_v48 = vmul.f32 %v754_v26, %v560_v46 }
 0x111   : > { %856 = vst.msk [vmem:[%s1334_s17 + $0x18] sm:$0xff] %vm307_vm0, %v824_v43  ;;  %872 = vst.msk [vmem:[%s1334_s17 + $0x98] sm:$0xff] %vm307_vm0, %v840_v44 }
 0x112   : > { %855 = vst.msk [vmem:[%s1334_s17 + $0x10] sm:$0xff] %vm307_vm0, %v823_v47  ;;  %871 = vst.msk [vmem:[%s1334_s17 + $0x90] sm:$0xff] %vm307_vm0, %v839_v48  ;;  %v1129_v49 = vpop.f32.mrb[4].mxu0  ;;  %v1153_v50 = vpop.f32.mrb[4].mxu1 }
 0x113   : > { %v826_v51 = vmul.f32 %v1129_v49, %v689_v11  ;;  %v842_v52 = vmul.f32 %v1153_v50, %v769_v27  ;;  %v490_v53 = vpop.f32.mrb[5].mxu0  ;;  %v570_v54 = vpop.f32.mrb[5].mxu1 }
 0x114   : > { %v825_v55 = vmul.f32 %v684_v12, %v490_v53  ;;  %v841_v56 = vmul.f32 %v764_v28, %v570_v54  ;;  %v809_v11 = vpop.permute.xlu1 %808  ;;  %v804_v12 = vpop.permute.xlu0 %803 }
 0x115   : > { %858 = vst.msk [vmem:[%s1334_s17 + $0x28] sm:$0xff] %vm307_vm0, %v826_v51  ;;  %874 = vst.msk [vmem:[%s1334_s17 + $0xa8] sm:$0xff] %vm307_vm0, %v842_v52 }
 0x116   : > { %857 = vst.msk [vmem:[%s1334_s17 + $0x20] sm:$0xff] %vm307_vm0, %v825_v55  ;;  %873 = vst.msk [vmem:[%s1334_s17 + $0xa0] sm:$0xff] %vm307_vm0, %v841_v56  ;;  %v1132_v59 = vpop.f32.mrb[6].mxu0  ;;  %v1156_v60 = vpop.f32.mrb[6].mxu1 }
 0x117   : > { %v828_v61 = vmul.f32 %v1132_v59, %v699_v13  ;;  %v844_v62 = vmul.f32 %v1156_v60, %v779_v29  ;;  %v500_v63 = vpop.f32.mrb[7].mxu0  ;;  %v580_v0 = vpop.f32.mrb[7].mxu1 }
 0x118   : > { %v827_v1 = vmul.f32 %v1436_v14, %v500_v63  ;;  %v843_v2 = vmul.f32 %v774_v30, %v580_v0  ;;  %v819_v33 = vpop.permute.xlu1 %818  ;;  %v814_v34 = vpop.permute.xlu0 %813 }
 0x119   : > { %860 = vst.msk [vmem:[%s1334_s17 + $0x38] sm:$0xff] %vm307_vm0, %v828_v61  ;;  %876 = vst.msk [vmem:[%s1334_s17 + $0xb8] sm:$0xff] %vm307_vm0, %v844_v62 }
 0x11a   : > { %859 = vst.msk [vmem:[%s1334_s17 + $0x30] sm:$0xff] %vm307_vm0, %v827_v1  ;;  %875 = vst.msk [vmem:[%s1334_s17 + $0xb0] sm:$0xff] %vm307_vm0, %v843_v2  ;;  %v1135_v3 = vpop.f32.mrb[8].mxu0  ;;  %v1159_v4 = vpop.f32.mrb[8].mxu1 }
 0x11b   : > { %v830_v5 = vmul.f32 %v1135_v3, %v1438_v15  ;;  %v846_v6 = vmul.f32 %v1159_v4, %v789_v39  ;;  %v510_v7 = vpop.f32.mrb[9].mxu0  ;;  %v590_v8 = vpop.f32.mrb[9].mxu1 }
 0x11c   : > { %v829_v9 = vmul.f32 %v1440_v16, %v510_v7  ;;  %v845_v10 = vmul.f32 %v784_v40, %v590_v8 }
 0x11d   : > { %862 = vst.msk [vmem:[%s1334_s17 + $0x48] sm:$0xff] %vm307_vm0, %v830_v5  ;;  %878 = vst.msk [vmem:[%s1334_s17 + $0xc8] sm:$0xff] %vm307_vm0, %v846_v6 }
 0x11e   : > { %861 = vst.msk [vmem:[%s1334_s17 + $0x40] sm:$0xff] %vm307_vm0, %v829_v9  ;;  %877 = vst.msk [vmem:[%s1334_s17 + $0xc0] sm:$0xff] %vm307_vm0, %v845_v10  ;;  %v1138_v13 = vpop.f32.mrb[10].mxu0  ;;  %v1162_v14 = vpop.f32.mrb[10].mxu1 }
 0x11f   : > { %v832_v15 = vmul.f32 %v1138_v13, %v1442_v17  ;;  %v848_v16 = vmul.f32 %v1162_v14, %v799_v57  ;;  %v520_v23 = vpop.f32.mrb[11].mxu0  ;;  %v600_v24 = vpop.f32.mrb[11].mxu1 }
 0x120   : > { %v831_v25 = vmul.f32 %v1444_v18, %v520_v23  ;;  %v847_v26 = vmul.f32 %v794_v58, %v600_v24 }
 0x121   : > { %864 = vst.msk [vmem:[%s1334_s17 + $0x58] sm:$0xff] %vm307_vm0, %v832_v15  ;;  %880 = vst.msk [vmem:[%s1334_s17 + $0xd8] sm:$0xff] %vm307_vm0, %v848_v16 }
 0x122   : > { %863 = vst.msk [vmem:[%s1334_s17 + $0x50] sm:$0xff] %vm307_vm0, %v831_v25  ;;  %879 = vst.msk [vmem:[%s1334_s17 + $0xd0] sm:$0xff] %vm307_vm0, %v847_v26  ;;  %v1141_v27 = vpop.f32.mrb[12].mxu0  ;;  %v1165_v17 = vpop.f32.mrb[12].mxu1 }
 0x123   : > { %v834_v28 = vmul.f32 %v1141_v27, %v1446_v19  ;;  %v850_v29 = vmul.f32 %v1165_v17, %v809_v11  ;;  %v530_v30 = vpop.f32.mrb[13].mxu0  ;;  %v610_v18 = vpop.f32.mrb[13].mxu1 }
 0x124   : > { %v833_v31 = vmul.f32 %v1448_v20, %v530_v30  ;;  %v849_v32 = vmul.f32 %v804_v12, %v610_v18 }
 0x125   : > { %866 = vst.msk [vmem:[%s1334_s17 + $0x68] sm:$0xff] %vm307_vm0, %v834_v28  ;;  %882 = vst.msk [vmem:[%s1334_s17 + $0xe8] sm:$0xff] %vm307_vm0, %v850_v29 }
 0x126   : > { %865 = vst.msk [vmem:[%s1334_s17 + $0x60] sm:$0xff] %vm307_vm0, %v833_v31  ;;  %881 = vst.msk [vmem:[%s1334_s17 + $0xe0] sm:$0xff] %vm307_vm0, %v849_v32  ;;  %v1144_v19 = vpop.f32.mrb[14].mxu0  ;;  %v1168_v35 = vpop.f32.mrb[14].mxu1 }
 0x127   : > { %v836_v36 = vmul.f32 %v1144_v19, %v1450_v21  ;;  %v852_v20 = vmul.f32 %v1168_v35, %v819_v33  ;;  %v540_v37 = vpop.f32.mrb[15].mxu0  ;;  %v620_v38 = vpop.f32.mrb[15].mxu1 }
 0x128   : > { %v835_v39 = vmul.f32 %v1452_v22, %v540_v37  ;;  %v851_v40 = vmul.f32 %v814_v34, %v620_v38 }
 0x129   : > { %868 = vst.msk [vmem:[%s1334_s17 + $0x78] sm:$0xff] %vm307_vm0, %v836_v36  ;;  %884 = vst.msk [vmem:[%s1334_s17 + $0xf8] sm:$0xff] %vm307_vm0, %v852_v20 }
 0x12a   : > { %867 = vst.msk [vmem:[%s1334_s17 + $0x70] sm:$0xff] %vm307_vm0, %v835_v39  ;;  %883 = vst.msk [vmem:[%s1334_s17 + $0xf0] sm:$0xff] %vm307_vm0, %v851_v40 }
 0x12b PF: > { %p1073_p3 = scmp.ne.s32.totalorder %s1319_s7, 0 }
 0x12c   : > { %vm889_vm1 = vcmask (!%p1073_p3), 261120   ;;  %v1264_v21 = vmov (!%p1073_p3), 0.0  }
 0x12d   : > { %888 = sbr.rel (%p1073_p3) target bundleno = 317 (0x13d), region = 40  ;;  %890 = vst.msk [vmem:[%s1334_s17] sm:$0xff] (!%p1073_p3), %vm889_vm1, %v1264_v21  ;;  %891 = vst.msk [vmem:[%s1334_s17 + $0x8] sm:$0xff] (!%p1073_p3), %vm889_vm1, %v1264_v21 }
 0x12e   : > { %892 = vst.msk [vmem:[%s1334_s17 + $0x10] sm:$0xff] (!%p1073_p3), %vm889_vm1, %v1264_v21  ;;  %893 = vst.msk [vmem:[%s1334_s17 + $0x18] sm:$0xff] (!%p1073_p3), %vm889_vm1, %v1264_v21 }
 0x12f   : > { %894 = vst.msk [vmem:[%s1334_s17 + $0x20] sm:$0xff] (!%p1073_p3), %vm889_vm1, %v1264_v21  ;;  %895 = vst.msk [vmem:[%s1334_s17 + $0x28] sm:$0xff] (!%p1073_p3), %vm889_vm1, %v1264_v21 }
 0x130   : > { %896 = vst.msk [vmem:[%s1334_s17 + $0x30] sm:$0xff] (!%p1073_p3), %vm889_vm1, %v1264_v21  ;;  %897 = vst.msk [vmem:[%s1334_s17 + $0x38] sm:$0xff] (!%p1073_p3), %vm889_vm1, %v1264_v21 }
 0x131   : > { %898 = vst.msk [vmem:[%s1334_s17 + $0x40] sm:$0xff] (!%p1073_p3), %vm889_vm1, %v1264_v21  ;;  %899 = vst.msk [vmem:[%s1334_s17 + $0x48] sm:$0xff] (!%p1073_p3), %vm889_vm1, %v1264_v21 }
 0x132   : > { %900 = vst.msk [vmem:[%s1334_s17 + $0x50] sm:$0xff] (!%p1073_p3), %vm889_vm1, %v1264_v21  ;;  %901 = vst.msk [vmem:[%s1334_s17 + $0x58] sm:$0xff] (!%p1073_p3), %vm889_vm1, %v1264_v21 }
 0x133   : > { %902 = vst.msk [vmem:[%s1334_s17 + $0x60] sm:$0xff] (!%p1073_p3), %vm889_vm1, %v1264_v21  ;;  %903 = vst.msk [vmem:[%s1334_s17 + $0x68] sm:$0xff] (!%p1073_p3), %vm889_vm1, %v1264_v21 }
 0x134   : > { %904 = vst.msk [vmem:[%s1334_s17 + $0x70] sm:$0xff] %vm889_vm1, %v1264_v21  ;;  %905 = vst.msk [vmem:[%s1334_s17 + $0x78] sm:$0xff] %vm889_vm1, %v1264_v21 }
 0x135   : > { %906 = vst.msk [vmem:[%s1334_s17 + $0x80] sm:$0xff] %vm889_vm1, %v1264_v21  ;;  %907 = vst.msk [vmem:[%s1334_s17 + $0x88] sm:$0xff] %vm889_vm1, %v1264_v21 }
 0x136   : > { %908 = vst.msk [vmem:[%s1334_s17 + $0x90] sm:$0xff] %vm889_vm1, %v1264_v21  ;;  %909 = vst.msk [vmem:[%s1334_s17 + $0x98] sm:$0xff] %vm889_vm1, %v1264_v21 }
 0x137   : > { %910 = vst.msk [vmem:[%s1334_s17 + $0xa0] sm:$0xff] %vm889_vm1, %v1264_v21  ;;  %911 = vst.msk [vmem:[%s1334_s17 + $0xa8] sm:$0xff] %vm889_vm1, %v1264_v21 }
 0x138   : > { %912 = vst.msk [vmem:[%s1334_s17 + $0xb0] sm:$0xff] %vm889_vm1, %v1264_v21  ;;  %913 = vst.msk [vmem:[%s1334_s17 + $0xb8] sm:$0xff] %vm889_vm1, %v1264_v21 }
 0x139   : > { %914 = vst.msk [vmem:[%s1334_s17 + $0xc0] sm:$0xff] %vm889_vm1, %v1264_v21  ;;  %915 = vst.msk [vmem:[%s1334_s17 + $0xc8] sm:$0xff] %vm889_vm1, %v1264_v21 }
 0x13a   : > { %916 = vst.msk [vmem:[%s1334_s17 + $0xd0] sm:$0xff] %vm889_vm1, %v1264_v21  ;;  %917 = vst.msk [vmem:[%s1334_s17 + $0xd8] sm:$0xff] %vm889_vm1, %v1264_v21 }
 0x13b   : > { %918 = vst.msk [vmem:[%s1334_s17 + $0xe0] sm:$0xff] %vm889_vm1, %v1264_v21  ;;  %919 = vst.msk [vmem:[%s1334_s17 + $0xe8] sm:$0xff] %vm889_vm1, %v1264_v21 }
 0x13c   : > { %920 = vst.msk [vmem:[%s1334_s17 + $0xf0] sm:$0xff] %vm889_vm1, %v1264_v21  ;;  %921 = vst.msk [vmem:[%s1334_s17 + $0xf8] sm:$0xff] %vm889_vm1, %v1264_v21 }
 0x13d PF: > { %s25_s28 = sadd.s32 1, %s1259_s28   ;;  %s1607_s1 = smov %s1255_s27 }
 0x13e   : > { %p22_p4 = scmp.ge.s32.totalorder %s25_s28, 7   ;;  %s1608_s27 = smov %s1610_s29 }
 0x140   :  { %24 = sbr.rel (!%p22_p4) target bundleno = 27 (0x1b), region = 76 }

</bundles_post_ra>
